<compile_context>
chip_gen: v7x
topology: tpu7x:2x2x1
jax: 0.10.0
libtpu: 0.0.40
codegen_flags: <defaults>
</compile_context>

<pallas_src>
import functools

import jax
import jax.numpy as jnp
from jax import lax
from jax.experimental import pallas as pl
from jax.experimental.pallas import tpu as pltpu


# ----------------------------- helpers --------------------------------------

def _round_up(a, m):
    return ((a + m - 1) // m) * m


def _pick_row_tile(n, requested):
    """Row tile: big (mem-bound sweet spot), multiple of 8, but keep >=2 grid
    steps when possible so both v7x TensorCores get work."""
    t = min(requested, _round_up(n, 8))
    if t >= n and n > 8:
        t = _round_up((n + 1) // 2, 8)
    return t


def _pad_rows(x, n_pad):
    n = x.shape[0]
    if n_pad == n:
        return x
    return jnp.pad(x, ((0, n_pad - n), (0, 0)))


# ----------------------------- Linear (+LeakyReLU) ---------------------------

def _linear_kernel(x_ref, wt_ref, b_ref, out_ref, *, negative_slope):
    x = x_ref[...]                                               # (tile, in_f)
    y = jnp.dot(x, wt_ref[...], preferred_element_type=jnp.float32)  # MXU
    y = y + b_ref[...]                                           # (1, out_f) bcast
    if negative_slope is not None:
        y = jnp.where(y >= 0.0, y, negative_slope * y)
    out_ref[...] = y.astype(out_ref.dtype)


def linear(x, w, b, *, leaky_relu=False, negative_slope=0.01, tile_n=512):
    """y = x @ w.T + b (PyTorch nn.Linear convention), optional LeakyReLU."""
    n, in_f = x.shape
    out_f, in_f2 = w.shape
    assert in_f == in_f2

    tile = _pick_row_tile(n, tile_n)
    n_pad = _round_up(n, tile)
    x_p = _pad_rows(x.astype(jnp.float32), n_pad)
    wt = jnp.transpose(w.astype(jnp.float32))        # transpose once, outside grid
    b2 = b.astype(jnp.float32).reshape(1, out_f)

    kernel = functools.partial(
        _linear_kernel,
        negative_slope=(float(negative_slope) if leaky_relu else None),
    )
    y = pl.pallas_call(
        kernel,
        out_shape=jax.ShapeDtypeStruct((n_pad, out_f), jnp.float32),
        grid_spec=pltpu.PrefetchScalarGridSpec(
            num_scalar_prefetch=0,
            grid=(n_pad // tile,),
            in_specs=[
                pl.BlockSpec((tile, in_f), lambda i: (i, 0)),   # sample row tile
                pl.BlockSpec((in_f, out_f), lambda i: (0, 0)),  # weight resident
                pl.BlockSpec((1, out_f), lambda i: (0, 0)),     # bias resident
            ],
            out_specs=pl.BlockSpec((tile, out_f), lambda i: (i, 0)),
        ),
        compiler_params=pltpu.CompilerParams(
            dimension_semantics=("parallel",)),
    )(x_p, wt, b2)
    return y[:n]


# ----------------------------- Clustering ------------------------------------

def _clustering_kernel(x_ref, ct_ref, cc_ref, out_ref, *, alpha, n_clusters):
    x = x_ref[...]                                       # (tile, F)
    ct = ct_ref[...]                                     # (F, K_pad) pre-transposed
    cc = cc_ref[...]                                     # (1, K_pad) hoisted ||mu||^2

    # squared distances via MXU-friendly expansion ||x||^2 + ||mu||^2 - 2 x@mu^T
    xx = jnp.sum(x * x, axis=-1, keepdims=True)          # (tile, 1)
    xc = jnp.dot(x, ct, preferred_element_type=jnp.float32)   # (tile, K_pad)
    d2 = jnp.maximum(xx + cc - 2.0 * xc, 0.0)

    if alpha == 1.0:
        # exponent (alpha+1)/2 == 1.0 -> skip the pow entirely
        q = 1.0 / (1.0 + d2)
    else:
        # q = (1 + d2/alpha)^(-(alpha+1)/2) without reciprocal-then-pow
        q = jnp.exp((-(alpha + 1.0) * 0.5) * jnp.log1p(d2 / alpha))

    # zero the lane-padding columns so they don't pollute the normalization
    k_pad = d2.shape[-1]
    lane = lax.broadcasted_iota(jnp.int32, (1, k_pad), 1)
    q = jnp.where(lane < n_clusters, q, 0.0)

    s = jnp.sum(q, axis=-1, keepdims=True)
    r = pl.reciprocal(s, approx=True)                    # EUP vrcp
    r = r * (2.0 - s * r)                                # one Newton step -> ~f32 acc.
    out_ref[...] = (q * r).astype(out_ref.dtype)


def clustering(x, clusters, *, alpha=1.0, tile_n=512):
    """x: (N, F), clusters: (K, F) -> (N, K) student-t soft assignments."""
    n, f = x.shape
    k, f2 = clusters.shape
    assert f == f2

    tile = _pick_row_tile(n, tile_n)
    n_pad = _round_up(n, tile)
    k_pad = _round_up(k, 128)                            # lane-dense output

    x_p = _pad_rows(x.astype(jnp.float32), n_pad)
    c32 = clusters.astype(jnp.float32)
    ct = jnp.zeros((f, k_pad), jnp.float32).at[:, :k].set(c32.T)
    cc = jnp.zeros((1, k_pad), jnp.float32).at[:, :k].set(jnp.sum(c32 * c32, axis=-1))

    kernel = functools.partial(_clustering_kernel, alpha=float(alpha), n_clusters=k)
    q = pl.pallas_call(
        kernel,
        out_shape=jax.ShapeDtypeStruct((n_pad, k_pad), jnp.float32),
        grid_spec=pltpu.PrefetchScalarGridSpec(
            num_scalar_prefetch=0,
            grid=(n_pad // tile,),
            in_specs=[
                pl.BlockSpec((tile, f), lambda i: (i, 0)),       # sample row tile
                pl.BlockSpec((f, k_pad), lambda i: (0, 0)),      # centroids resident
                pl.BlockSpec((1, k_pad), lambda i: (0, 0)),      # centroid norms
            ],
            out_specs=pl.BlockSpec((tile, k_pad), lambda i: (i, 0)),
        ),
        compiler_params=pltpu.CompilerParams(
            dimension_semantics=("parallel",)),
    )(x_p, ct, cc)
    return q[:n, :k]


# ----------------------------- HybridModel forward ---------------------------

def hybrid_forward(x, params, clusters, *, alpha=1.0):
    # Encoder: Linear -> LeakyReLU -> Linear
    h = linear(x, params["enc_w1"], params["enc_b1"], leaky_relu=True)
    enc = linear(h, params["enc_w2"], params["enc_b2"], leaky_relu=False)
    # Decoder: Linear -> LeakyReLU -> Linear
    h = linear(enc, params["dec_w1"], params["dec_b1"], leaky_relu=True)
    dec = linear(h, params["dec_w2"], params["dec_b2"], leaky_relu=False)
    # Clustering head on the encoding
    clu = clustering(enc, clusters, alpha=alpha)
    return dec, clu


# ----------------------------- reference (pure JAX) ---------------------------

def _reference(x, params, clusters, alpha=1.0):
    hp = jax.lax.Precision.HIGHEST

    def leaky(v):
        return jnp.where(v >= 0, v, 0.01 * v)

    h = leaky(jnp.dot(x, params["enc_w1"].T, precision=hp) + params["enc_b1"])
    enc = jnp.dot(h, params["enc_w2"].T, precision=hp) + params["enc_b2"]
    h = leaky(jnp.dot(enc, params["dec_w1"].T, precision=hp) + params["dec_b1"])
    dec = jnp.dot(h, params["dec_w2"].T, precision=hp) + params["dec_b2"]

    d2 = jnp.sum((enc[:, None, :] - clusters[None, :, :]) ** 2, axis=2)
    q = 1.0 / (1.0 + d2 / alpha)
    q = q ** ((alpha + 1.0) / 2.0)
    q = q / jnp.sum(q, axis=1, keepdims=True)
    return dec, q


if __name__ == "__main__":
    key = jax.random.PRNGKey(0)
    ks = jax.random.split(key, 10)

    dims = [32, 64, 16]              # HybridModel(dims): input -> hidden -> latent
    n_samples, n_clusters, alpha = 16, 10, 1.0

    x = jax.random.normal(ks[0], (n_samples, dims[0]), dtype=jnp.float32)
    params = {
        "enc_w1": 0.1 * jax.random.normal(ks[1], (dims[1], dims[0]), jnp.float32),
        "enc_b1": 0.1 * jax.random.normal(ks[2], (dims[1],), jnp.float32),
        "enc_w2": 0.1 * jax.random.normal(ks[3], (dims[2], dims[1]), jnp.float32),
        "enc_b2": 0.1 * jax.random.normal(ks[4], (dims[2],), jnp.float32),
        "dec_w1": 0.1 * jax.random.normal(ks[5], (dims[1], dims[2]), jnp.float32),
        "dec_b1": 0.1 * jax.random.normal(ks[6], (dims[1],), jnp.float32),
        "dec_w2": 0.1 * jax.random.normal(ks[7], (dims[0], dims[1]), jnp.float32),
        "dec_b2": 0.1 * jax.random.normal(ks[8], (dims[0],), jnp.float32),
    }
    # TODO(synk): the PyTorch module loads cluster_centers.npy from disk; a
    # deterministic in-script stand-in of the same shape (K, latent) is used here.
    clusters = jax.random.normal(ks[9], (n_clusters, dims[2]), dtype=jnp.float32)

    dec, clu = hybrid_forward(x, params, clusters, alpha=alpha)
    jax.block_until_ready((dec, clu))

    dec_ref, clu_ref = _reference(x, params, clusters, alpha=alpha)

    assert dec.shape == (n_samples, dims[0])
    assert clu.shape == (n_samples, n_clusters)
    assert jnp.allclose(dec, dec_ref, atol=1e-4, rtol=1e-4)
    assert jnp.allclose(clu, clu_ref, atol=1e-5, rtol=1e-5)
    assert jnp.allclose(jnp.sum(clu, axis=1), 1.0, atol=1e-5)

    print("KERNEL_OK")
</pallas_src>

<mosaic_0001>
module attributes {stable_mosaic.version = 11 : i64} {
  func.func @_linear_kernel(%arg0: i32, %arg1: memref<8x32xf32, #tpu.memory_space<vmem>>, %arg2: memref<32x64xf32, #tpu.memory_space<vmem>>, %arg3: memref<1x64xf32, #tpu.memory_space<vmem>>, %arg4: memref<8x64xf32, #tpu.memory_space<vmem>>) attributes {dimension_semantics = [#tpu.dimension_semantics<parallel>], iteration_bounds = array<i64: 2>, scalar_prefetch = 0 : i64, scratch_operands = 0 : i64, tpu.core_type = #tpu.core_type<tc>, window_params = [{transform_indices = @transform_0, window_bounds = array<i64: 8, 32>}, {pipeline_mode = #tpu.pipeline_mode<synchronous>, transform_indices = @transform_1, window_bounds = array<i64: 32, 64>}, {pipeline_mode = #tpu.pipeline_mode<synchronous>, transform_indices = @transform_2, window_bounds = array<i64: 1, 64>}, {transform_indices = @transform_3, window_bounds = array<i64: 8, 64>}]} {
    %c0 = arith.constant 0 : index
    %c0_0 = arith.constant 0 : index
    %0 = vector.load %arg1[%c0, %c0_0] : memref<8x32xf32, #tpu.memory_space<vmem>>, vector<8x32xf32>
    %c0_1 = arith.constant 0 : index
    %c0_2 = arith.constant 0 : index
    %1 = vector.load %arg2[%c0_1, %c0_2] : memref<32x64xf32, #tpu.memory_space<vmem>>, vector<32x64xf32>
    %cst = arith.constant dense<0.000000e+00> : vector<8x64xf32>
    %2 = tpu.matmul %0, %1, %cst {dimension_numbers = #tpu.dot_dimension_numbers<[1], [0], [0], [1], [0, 0, 1, 1], [], []>} : vector<8x32xf32>, vector<32x64xf32>, vector<8x64xf32> -> vector<8x64xf32>
    %c0_3 = arith.constant 0 : index
    %c0_4 = arith.constant 0 : index
    %3 = vector.load %arg3[%c0_3, %c0_4] : memref<1x64xf32, #tpu.memory_space<vmem>>, vector<1x64xf32>
    %4 = vector.broadcast %3 : vector<1x64xf32> to vector<8x64xf32>
    %5 = arith.addf %2, %4 : vector<8x64xf32>
    %cst_5 = arith.constant 0.000000e+00 : f32
    %6 = vector.broadcast %cst_5 : f32 to vector<8x64xf32>
    %7 = arith.cmpf oge, %5, %6 : vector<8x64xf32>
    %cst_6 = arith.constant 0.00999999977 : f32
    %8 = vector.broadcast %cst_6 : f32 to vector<8x64xf32>
    %9 = arith.mulf %8, %5 : vector<8x64xf32>
    %10 = arith.select %7, %5, %9 : vector<8x64xi1>, vector<8x64xf32>
    %c0_7 = arith.constant 0 : index
    %c0_8 = arith.constant 0 : index
    %11 = vector.load %arg4[%c0_7, %c0_8] : memref<8x64xf32, #tpu.memory_space<vmem>>, vector<8x64xf32>
    tpu.vector_store %arg4[%c0_7, %c0_8], %10 {strides = array<i32>} : memref<8x64xf32, #tpu.memory_space<vmem>>, vector<8x64xf32>,
    return
  }
  func.func @transform_0(%arg0: i32) -> (i32, i32) {
    %c0_i32 = arith.constant 0 : i32
    %c0_i32_0 = arith.constant 0 : i32
    return %arg0, %c0_i32 : i32, i32
  }
  func.func @transform_1(%arg0: i32) -> (i32, i32) {
    %c0_i32 = arith.constant 0 : i32
    %c0_i32_0 = arith.constant 0 : i32
    %c0_i32_1 = arith.constant 0 : i32
    return %c0_i32, %c0_i32_0 : i32, i32
  }
  func.func @transform_2(%arg0: i32) -> (i32, i32) {
    %c0_i32 = arith.constant 0 : i32
    %c0_i32_0 = arith.constant 0 : i32
    %c0_i32_1 = arith.constant 0 : i32
    return %c0_i32, %c0_i32_0 : i32, i32
  }
  func.func @transform_3(%arg0: i32) -> (i32, i32) {
    %c0_i32 = arith.constant 0 : i32
    %c0_i32_0 = arith.constant 0 : i32
    return %arg0, %c0_i32 : i32, i32
  }
}

</mosaic_0001>

<bundles_post_ra>
// kernel: tpu_custom_call.1
= control target key start
LH: loop header
LB: loop body
LE: loop exit
PB: predicated region body
PF: predicated region fallthrough
CT: control target
= control target key end

     0   :  { %8 = vsyncpa [#allocation3], 0  ;;  %s843_s0 = inlined_call_operand.hbm [shape: f32[16,32], index: 0, kind: input, shape index: {}]   ;;  %s844_s1 = inlined_call_operand.hbm [shape: f32[32,64], index: 1, kind: input, shape index: {}]   ;;  %s845_s2 = inlined_call_operand.vmem [shape: f32[1,64], index: 2, kind: input, shape index: {}]   ;;  %s846_s3 = inlined_call_operand.hbm [shape: f32[16,64], index: 3, kind: output, shape index: {}]  }
   0x1   :  { %10 = vsyncpa [#allocation3 + $0x1], 0 }
   0x2   :  { %11 = vsyncpa [#allocation6], 0 }
   0x3   :  { %12 = vsyncpa [#allocation4], 0 }
   0x4   :  { %14 = vsyncpa [#allocation4 + $0x1], 0  ;;  %s644_s12 = smov 0   ;;  %s646_s13 = smov 0  }
   0x5   :  { %s648_s14 = smov 0   ;;  %s650_s15 = smov 0  }
   0x6 LB: > { %s665_s16 = sadd.s32 4294967295, %s614_s15   ;;  %s386_s17 = sadd.s32 4294967294, %s614_s15   ;;  %s614_s15 = sphi %s650_s15, %s866_s15   ;;  %s610_s14 = sphi %s648_s14, %s865_s14   ;;  %s606_s13 = sphi %s646_s13, %s864_s13   ;;  %s602_s12 = sphi %s644_s12, %s863_s12  }
   0x7   : > { %p40_p0 = scmp.ne.s32.totalorder %s606_s13, %s602_s12  ;;  %p847_p1 = scmp.eq.s32.totalorder %s665_s16, 0 }
   0x8   : > { %p112_p3 = scmp.eq.s32.totalorder %s386_s17, 1  ;;  %p387_p5 = scmp.ge.s32.totalorder %s614_s15, 1 }
   0x9   : > { %p674_p4 = por %p847_p1, %p40_p0  ;;  %p119_p7 = scmp.lt.s32.totalorder %s614_s15, 3 }
   0xa   : > { %p679_p6 = por %p112_p3, %p40_p0  ;;  %s616_s21 = smov [#allocation5]  }
   0xb   : > { %s850_s18 = scalar_select %p674_p4, 1, 0 }
   0xc   : > { %s851_s19 = scalar_select %p679_p6, 1, 0 }
   0xd   : > { %p684_p8 = pnand %p387_p5, %p119_p7  ;;  %s131_s22 = sshll.u32 %s616_s21, 4  ;;  %s688_s22 = int_to_ptr.vmem [resolvable:$true] %s131_s22 }
   0xe   : > { %s700_s24 = sadd.s32 1, %s614_s15   ;;  %s27_s25 = sadd.s32 1, %s610_s14 }
   0xf   : > { %s852_s20 = scalar_select %p684_p8, 1, 0 }
  0x10   : > { %p432_p9 = pneg %p684_p8  ;;  %s24_s26 = ssub.s32 %s614_s15, %s700_s24 }
  0x11   : > { %s486_s29 = scalar_lea.hbm %s844_s1, 512 }
  0x12   : > { %p695_p11 = pnand %p432_p9, %p847_p1  ;;  %p487_p12 = scmp.ne.s32.totalorder %s844_s1, %s486_s29 }
  0x13   : > { %p493_p5 = scmp.lt.u32.totalorder %s486_s29, %s844_s1 }
  0x14   : > { %p488_p13 = pneg %p695_p11 }
  0x16   : > { %p489_p0 = pnand %p488_p13, %p487_p12 }
  0x18   : > { %p490_p3 = pneg %p489_p0 }
  0x1a   : > { %p495_p7 = pnand %p493_p5, %p490_p3 }
  0x1c   : > { %498 = shalt.err (!%p495_p7)
}
  0x1d   : > { %s499_s7 = scalar_lea.vmem %s688_s22, 512  ;;  %p507_p2 = scmp.lt.s32.totalorder %s688_s22, %s688_s22 }
  0x1e   : > { %p500_p9 = scmp.ne.s32.totalorder %s688_s22, %s499_s7  ;;  %p508_p6 = scmp.lt.s32.totalorder %s499_s7, %s499_s7 }
  0x20   : > { %p502_p10 = pnand %p500_p9, %p488_p13  ;;  %p509_p4 = por %p508_p6, %p507_p2 }
  0x22   : > { %p503_p1 = pneg %p502_p10 }
  0x24   : > { %p510_p8 = pnand %p509_p4, %p503_p1 }
  0x26   : > { %513 = shalt.err (!%p510_p8)
}
  0x27   : > { %s617_s8 = smov 128   ;;  %s618_s9 = smov 8  }
  0x28   : > { %435 = dma.hbm_to_vmem [thread:$0]  (!%p695_p11), %s844_s1, 512, %s688_s22, [#allocation6], %s617_s8, %s617_s8, %s618_s9  }
  0x29   : > { %p25_p2 = scmp.eq.s32.totalorder %s24_s26, 0  ;;  %p34_p1 = scmp.ne.s32.totalorder %s610_s14, %s606_s13 }
  0x2a   : > { %p35_p4 = scmp.eq.s32.totalorder %s614_s15, 0  ;;  %p445_p6 = scmp.lt.s32.totalorder %s614_s15, 2 }
  0x2b   : > { %s731_s17 = scalar_select %p25_p2, %s610_s14, %s27_s25  }
  0x2c   : > { %p36_p8 = por %p35_p4, %p34_p1  ;;  %p854_p10 = scmp.eq.s32.totalorder %s665_s16, 1 }
  0x2d   : > { %s148_s27 = sand.u32 1, %s610_s14   ;;  %s391_s28 = sshll.u32 %s614_s15, 7 }
  0x2e   : > { %p735_p12 = por %p854_p10, %p34_p1  ;;  %s390_s29 = sshll.u32 %s148_s27, 3 }
  0x2f   : > { %s744_s4 = scalar_lea.hbm %s843_s0, %s391_s28  ;;  %s152_s22 = scalar_lea.vmem [#allocation2], %s390_s29 }
  0x30   : > { %s159_s25 = sshll.u32 %s152_s22, 4  ;;  %p746_p11 = pnand %p445_p6, %p36_p8  ;;  %s750_s25 = int_to_ptr.vmem [resolvable:$true] %s159_s25 }
  0x31   : > { %s149_s5 = scalar_lea.sflag [#allocation3], %s148_s27  ;;  %s514_s6 = scalar_lea.hbm %s744_s4, 128 }
  0x32   : > { %p515_p13 = scmp.ne.s32.totalorder %s744_s4, %s514_s6  ;;  %p516_p0 = pneg %p746_p11 }
  0x33   : > { %s519_s9 = scalar_lea.hbm %s843_s0, 256  ;;  %p520_p7 = scmp.lt.u32.totalorder %s744_s4, %s843_s0 }
  0x34   : > { %p517_p3 = pnand %p516_p0, %p515_p13  ;;  %p521_p9 = scmp.lt.u32.totalorder %s519_s9, %s514_s6 }
  0x35   : > { %p523_p1 = scmp.lt.u32.totalorder %s514_s6, %s744_s4 }
  0x36   : > { %p518_p5 = pneg %p517_p3  ;;  %p522_p2 = por %p521_p9, %p520_p7 }
  0x38   : > { %p524_p4 = por %p523_p1, %p522_p2 }
  0x3a   : > { %p525_p6 = pnand %p524_p4, %p518_p5 }
  0x3c   : > { %528 = shalt.err (!%p525_p6)
}
  0x3d   : > { %s529_s27 = scalar_lea.vmem %s750_s25, 128  ;;  %s619_s28 = smov [#allocation2]  }
  0x3e   : > { %p530_p8 = scmp.ne.s32.totalorder %s750_s25, %s529_s27  ;;  %s534_s29 = sshll.u32 %s619_s28, 4  ;;  %s535_s29 = int_to_ptr.vmem [resolvable:$false] %s534_s29 }
  0x3f   : > { %s536_s23 = scalar_lea.vmem %s535_s29, 256  ;;  %p537_p3 = scmp.lt.s32.totalorder %s750_s25, %s535_s29 }
  0x40   : > { %p532_p10 = pnand %p530_p8, %p516_p0  ;;  %p538_p7 = scmp.lt.s32.totalorder %s536_s23, %s529_s27 }
  0x42   : > { %p533_p13 = pneg %p532_p10  ;;  %p539_p9 = por %p538_p7, %p537_p3 }
  0x44   : > { %p540_p2 = pnand %p539_p9, %p533_p13 }
  0x46   : > { %543 = shalt.err (!%p540_p2)
}
  0x47   : > { %439 = dma.hbm_to_vmem [thread:$0]  (!%p746_p11), %s744_s4, 128, %s750_s25, %s149_s5  }
  0x48   : > { %p857_p5 = scmp.ne.s32.totalorder %s852_s20, 0 }
  0x49   : > { %s780_s30 = sand.u32 (!%p857_p5), 1, %s606_s13   ;;  %p858_p0 = scmp.ne.s32.totalorder (!%p857_p5), %s850_s18, 0 }
  0x4a   : > { %168 = sbr.rel (%p857_p5) target bundleno = 326 (0x146), region = 32  ;;  %s393_s22 = sshll.u32 (!%p857_p5), %s780_s30, 3 }
  0x4b   : > { %s171_s6 = scalar_lea.sflag (!%p857_p5), [#allocation3], %s780_s30  ;;  %s174_s7 = scalar_lea.vmem (!%p857_p5), [#allocation2], %s393_s22 }
  0x51   : > { %589 = dma.done.wait (%p858_p0), %s171_s6, 128  }
  0x52   : > { %591 = vsyncadd (%p858_p0), %s171_s6, 4294967168  ;;  %p859_p1 = scmp.eq.s32.totalorder %s665_s16, 0 }
  0x54   : > { %593 = dma.done.wait (%p859_p1), [#allocation6], 512   ;;  %p860_p11 = pmov %p859_p1 }
  0x55   : > { %v620_v0 = vmov 0.0|0.0   ;;  %vm621_vm0 = vmmov 0   ;;  %v622_v1 = vmov 0.0   ;;  %v202_v2 = vld [vmem:[#allocation5] sm:$0xff]  ;;  %v203_v3 = vld [vmem:[#allocation5 + $0x8] sm:$0xff]  ;;  %v204_v4 = vld [vmem:[#allocation5 + $0x10] sm:$0xff] }
  0x56   : > { %595 = vsyncadd (%p860_p11), [#allocation6], 4294966784  ;;  %418 = vmatprep.subr.bf16.mxu0 %v620_v0  ;;  %415 = vmatprep.mubr.msk.f32.mxu0 %vm621_vm0, %v622_v1  ;;  %v419_v5 = vpack.c.bf16 %v203_v3, %v202_v2  ;;  %v205_v6 = vld [vmem:[#allocation5 + $0x18] sm:$0xff]  ;;  %vm213_vm1 = vcmask 261120   ;;  %v396_v9 = vld [vmem:[%s845_s2] ss:$0 sm:$0xff] }
  0x57   : > { %v422_v7 = vpack.c.bf16 %v205_v6, %v204_v4  ;;  %v201_v8 = vld [vmem:[%s174_s7] sm:$0xff]  ;;  %s399_s4 = sshll.u32 %s665_s16, 7  ;;  %s200_s25 = scalar_lea.vmem [#allocation7], %s393_s22  ;;  %vm290_vm3 = vcmask 523264  }
  0x58   : > { %420 = vmatpush3.bf16.msra.mxu0 %v419_v5  ;;  %s306_s26 = sshll.u32 %s200_s25, 4  ;;  %s799_s9 = scalar_lea.hbm %s846_s3, %s399_s4  ;;  %s801_s26 = int_to_ptr.vmem [resolvable:$true] %s306_s26 }
  0x59   : > { %421 = vmatprep.subr.bf16.mxu0 %v620_v0  ;;  %s293_s10 = scalar_lea.sflag [#allocation4], %s780_s30  ;;  %s544_s11 = scalar_lea.vmem %s801_s26, 128 }
  0x5a   : > { %p545_p4 = scmp.ne.s32.totalorder %s801_s26, %s544_s11  ;;  %s623_s16 = smov [#allocation7]  }
  0x5b   : > { %s548_s27 = sshll.u32 %s623_s16, 4  ;;  %s549_s27 = int_to_ptr.vmem [resolvable:$false] %s548_s27 }
  0x5c   : > { %423 = vmatpush3.bf16.msra.mxu0 %v422_v7  ;;  %p546_p6 = pnand %p545_p4, %p735_p12  ;;  %s550_s28 = scalar_lea.vmem %s549_s27, 256 }
  0x5d   : > { %p551_p10 = scmp.lt.s32.totalorder %s801_s26, %s549_s27  ;;  %p552_p13 = scmp.lt.s32.totalorder %s550_s28, %s544_s11 }
  0x5e   : > { %p547_p8 = pneg %p546_p6 }
  0x5f   : > { %416 = vmatmul.mubr.msk.f32.vlgmr.msra.gmra.mrb[0].mxu0 %vm213_vm1, %v201_v8  ;;  %p553_p3 = por %p552_p13, %p551_p10 }
  0x61   : > { %p554_p7 = pnand %p553_p3, %p547_p8 }
 0x132   : > { %v283_v10 = vpop.f32.mrb[0].mxu0 }
 0x133   : > { %v284_v11 = vadd.f32 %v396_v9, %v283_v10  ;;  %v417_v12 = vpop.f32.mrb[1].mxu0 }
 0x135   : > { %vm287_vm2 = vcmp.ge.f32.partialorder %v284_v11, 0.0  ;;  %v288_v13 = vmul.f32 0.01, %v284_v11 }
 0x137   : > { %v289_v14 = vsel %vm287_vm2, %v284_v11, %v288_v13 }
 0x138   : > { %291 = vst.msk [vmem:[%s200_s25] sm:$0xff] %vm290_vm3, %v289_v14 }
 0x139   : > { %557 = shalt.err (!%p554_p7)
}
 0x13a   : > { %s558_s29 = scalar_lea.hbm %s799_s9, 128  ;;  %s562_s22 = scalar_lea.hbm %s846_s3, 256 }
 0x13b   : > { %p559_p9 = scmp.ne.s32.totalorder %s799_s9, %s558_s29  ;;  %p563_p0 = scmp.lt.u32.totalorder %s799_s9, %s846_s3 }
 0x13c   : > { %p564_p1 = scmp.lt.u32.totalorder %s562_s22, %s558_s29  ;;  %p566_p4 = scmp.lt.u32.totalorder %s558_s29, %s799_s9 }
 0x13d   : > { %p560_p2 = pnand %p559_p9, %p735_p12 }
 0x13e   : > { %p565_p11 = por %p564_p1, %p563_p0 }
 0x13f   : > { %p561_p5 = pneg %p560_p2 }
 0x140   : > { %p567_p6 = por %p566_p4, %p565_p11 }
 0x142   : > { %p568_p8 = pnand %p567_p6, %p561_p5 }
 0x144   : > { %571 = shalt.err (!%p568_p8)
}
 0x145   : > { %430 = dma.vmem_to_hbm [thread:$0]  (%p735_p12), %s801_s26, 128, %s799_s9, %s293_s10  }
 0x146 PF: > { %s318_s18 = sand.u32 1, %s602_s12   ;;  %p861_p10 = scmp.ne.s32.totalorder %s851_s19, 0 }
 0x147   : > { %p862_p13 = scmp.ge.s32.totalorder %s614_s15, 2  ;;  %s319_s20 = scalar_lea.sflag [#allocation4], %s318_s18 }
 0x149   : > { %p441_p3 = pnand %p862_p13, %p861_p10 }
 0x14b   : > { %597 = dma.done.wait (!%p441_p3), %s319_s20, 128  }
 0x14c   : > { %599 = vsyncadd (!%p441_p3), %s319_s20, 4294967168  ;;  %p17_p7 = scmp.ge.s32.totalorder %s700_s24, 4   ;;  %s863_s12 = smov %s606_s13 }
 0x14d   : > { %s864_s13 = smov %s610_s14  ;;  %s865_s14 = smov %s731_s17 }
 0x14e   : > { %s866_s15 = smov %s700_s24  ;;  %19 = sbr.rel (!%p17_p7) target bundleno = 6 (0x6), region = 81 }
 0x155   :  { %324 = vsyncpa [#allocation3], 1 }
 0x156   :  { %326 = vsyncpa [#allocation3 + $0x1], 1 }
 0x157   :  { %327 = vsyncpa [#allocation6], 1 }
 0x158   :  { %328 = vsyncpa [#allocation4], 1 }
 0x159   :  { %330 = vsyncpa [#allocation4 + $0x1], 1 }

</bundles_post_ra>
